<compile_context>
chip_gen: v6e
topology: v6e:2x2x1
jax: 0.10.0
libtpu: 0.0.40
codegen_flags: <defaults>
</compile_context>

<pallas_src>
import functools

import jax
import jax.numpy as jnp
from jax.experimental import pallas as pl
from jax.experimental.pallas import tpu as pltpu


MODALITY_ORDER = ('clinical', 'mRNA', 'miRNA', 'CNV')


# ----------------------------------------------------------------------------
# Fused forward kernel: everything in one pass, intermediates never leave VMEM.
# ----------------------------------------------------------------------------
def _fused_net_kernel(
    cat_ref, cont_ref, mrna_ref, mirna_ref, cnv_ref,
    emb0_ref, emb1_ref, wc_e0_ref, wc_e1_ref, wc_ct_ref, bc_ref,
    wm_ref, bm_ref, wmi_ref, bmi_ref, wcv_ref, bcv_ref,
    watt_ref, batt_ref, wh_ref, bh_ref,
    reps_ref, hazard_ref, *, m_length):
    f32 = jnp.float32

    # ----- clinical submodel: one-hot embedding lookup (MXU) + linear + ReLU
    cat = cat_ref[...]                                       # (B, 2) int32
    B = cat.shape[0]
    v0 = emb0_ref.shape[0]
    v1 = emb1_ref.shape[0]
    oh0 = (jax.lax.broadcasted_iota(jnp.int32, (B, v0), 1) == cat[:, 0:1]).astype(f32)
    oh1 = (jax.lax.broadcasted_iota(jnp.int32, (B, v1), 1) == cat[:, 1:2]).astype(f32)
    e0 = jnp.dot(oh0, emb0_ref[...], preferred_element_type=f32)        # (B, E)
    e1 = jnp.dot(oh1, emb1_ref[...], preferred_element_type=f32)        # (B, E)
    # fc weight is pre-split along its input slices (emb0 | emb1 | cont), so
    # the sum of three matmuls equals concat([e0, e1, cont]) @ W_fc (no concat).
    clin = (jnp.dot(e0, wc_e0_ref[...], preferred_element_type=f32)
            + jnp.dot(e1, wc_e1_ref[...], preferred_element_type=f32)
            + jnp.dot(cont_ref[...], wc_ct_ref[...], preferred_element_type=f32)
            + bc_ref[...])
    r_clin = jnp.maximum(clin, 0.0)

    # ----- omics submodels: Linear + ReLU
    r_mrna = jnp.maximum(
        jnp.dot(mrna_ref[...], wm_ref[...], preferred_element_type=f32) + bm_ref[...], 0.0)
    r_mirna = jnp.maximum(
        jnp.dot(mirna_ref[...], wmi_ref[...], preferred_element_type=f32) + bmi_ref[...], 0.0)
    r_cnv = jnp.maximum(
        jnp.dot(cnv_ref[...], wcv_ref[...], preferred_element_type=f32) + bcv_ref[...], 0.0)

    reps = (r_clin, r_mrna, r_mirna, r_cnv)

    # ----- attention fusion: per-modality score via MXU matvec, softmax over
    #       the modality axis, weighted sum of representations.
    watt = watt_ref[...]                                     # (L, 1)
    batt = batt_ref[...]                                     # (1, 1) -> broadcasts
    scores = [jnp.dot(r, watt, preferred_element_type=f32) + batt for r in reps]  # (B, 1)
    s_max = scores[0]
    for s in scores[1:]:
        s_max = jnp.maximum(s_max, s)
    exps = [jnp.exp(s - s_max) for s in scores]
    denom = exps[0]
    for e in exps[1:]:
        denom = denom + e
    inv_denom = 1.0 / denom
    fused = (exps[0] * inv_denom) * reps[0]
    for e, r in zip(exps[1:], reps[1:]):
        fused = fused + (e * inv_denom) * r                  # (B, L)

    # ----- hazard head: L1..L4 are activation-free in the reference forward,
    #       pre-collapsed into a single affine map (w_h: (L, 1), b_h: (1, 1)).
    hz = jnp.dot(fused, wh_ref[...], preferred_element_type=f32) + bh_ref[...]
    hazard_ref[...] = jax.nn.sigmoid(hz).astype(hazard_ref.dtype)

    # ----- packed, lane-dense representation output: [clinical|mRNA|miRNA|CNV]
    L = m_length
    for i, r in enumerate(reps):
        reps_ref[:, i * L:(i + 1) * L] = r.astype(reps_ref.dtype)


# ----------------------------------------------------------------------------
# Parameter init (PyTorch nn.Linear-style uniform bounds) + one-time prep.
# Weights are stored pre-transposed to (in_features, out_features).
# ----------------------------------------------------------------------------
def _init_linear(key, din, dout):
    kw, kb = jax.random.split(key)
    bound = 1.0 / jnp.sqrt(jnp.float32(din))
    w = jax.random.uniform(kw, (din, dout), jnp.float32, -bound, bound)
    b = jax.random.uniform(kb, (1, dout), jnp.float32, -bound, bound)
    return w, b


def init_params(key, m_length, dims, clin_vocab=(8, 6), clin_emb=2, n_cont=2):
    keys = jax.random.split(key, 12)
    params = {'m_length': m_length, 'clin_emb': clin_emb, 'n_cont': n_cont}
    emb0 = 0.1 * jax.random.normal(keys[0], (clin_vocab[0], clin_emb), jnp.float32)
    emb1 = 0.1 * jax.random.normal(keys[1], (clin_vocab[1], clin_emb), jnp.float32)
    clin_in = 2 * clin_emb + n_cont
    params['clinical'] = {'emb0': emb0, 'emb1': emb1,
                          'fc': _init_linear(keys[2], clin_in, m_length)}
    params['mRNA'] = _init_linear(keys[3], dims['mRNA'], m_length)
    params['miRNA'] = _init_linear(keys[4], dims['miRNA'], m_length)
    params['CNV'] = _init_linear(keys[5], dims['CNV'], m_length)
    params['attention'] = _init_linear(keys[6], m_length, 1)       # (L, 1), (1, 1)
    params['hazard'] = (
        _init_linear(keys[7], m_length, 256),
        _init_linear(keys[8], 256, 128),
        _init_linear(keys[9], 128, 64),
        _init_linear(keys[10], 64, 1),
    )
    return params


def prepare_params(params):
    """One-time prep for the fused kernel.

    * splits the clinical fc weight along its input slices (emb0 | emb1 | cont)
      so the kernel needs no in-kernel concat;
    * collapses hazard_layer1..4 into a single affine map — exact, because the
      reference Net.forward applies no nonlinearity between those four layers.
    """
    E = params['clin_emb']
    n_cont = params['n_cont']
    wc, bc = params['clinical']['fc']
    (w1, b1), (w2, b2), (w3, b3), (w4, b4) = params['hazard']
    w_h = w1 @ w2 @ w3 @ w4                                    # (L, 1)
    b_h = ((b1 @ w2 + b2) @ w3 + b3) @ w4 + b4                 # (1, 1)
    return {
        'm_length': params['m_length'],
        'clinical': {
            'emb0': params['clinical']['emb0'],
            'emb1': params['clinical']['emb1'],
            'w_e0': wc[:E],
            'w_e1': wc[E:2 * E],
            'w_ct': wc[2 * E:2 * E + n_cont],
            'b': bc,
        },
        'mRNA': params['mRNA'],
        'miRNA': params['miRNA'],
        'CNV': params['CNV'],
        'attention': params['attention'],
        'hazard_head': (w_h, b_h),
    }


# ----------------------------------------------------------------------------
# Full forward pass (mirrors Net.forward) — single fused pallas_call.
# ----------------------------------------------------------------------------
def net_forward(prepared, x):
    cat = x['clinical_categorical'].astype(jnp.int32)          # (B, 2)
    cont = x['clinical_continuous'].astype(jnp.float32)        # (B, 2)
    mrna = x['mRNA'].astype(jnp.float32)
    mirna = x['miRNA'].astype(jnp.float32)
    cnv = x['CNV'].astype(jnp.float32)

    B = cat.shape[0]
    L = prepared['m_length']
    clin = prepared['clinical']
    (wm, bm), (wmi, bmi), (wcv, bcv) = (prepared['mRNA'], prepared['miRNA'],
                                        prepared['CNV'])
    watt, batt = prepared['attention']
    w_h, b_h = prepared['hazard_head']

    inputs = [cat, cont, mrna, mirna, cnv,
              clin['emb0'], clin['emb1'],
              clin['w_e0'], clin['w_e1'], clin['w_ct'], clin['b'],
              wm, bm, wmi, bmi, wcv, bcv,
              watt, batt, w_h, b_h]

    # Advisory cost estimate for the XLA scheduler.
    v0, e_dim = clin['emb0'].shape
    v1 = clin['emb1'].shape[0]
    dm, dmi, dc = mrna.shape[1], mirna.shape[1], cnv.shape[1]
    flops = 2 * B * ((v0 + v1) * e_dim + 2 * e_dim * L + cont.shape[1] * L
                     + (dm + dmi + dc) * L        # omics encoders
                     + 4 * L                      # attention scores
                     + L)                         # hazard affine
    flops += 24 * B * L                           # relu / softmax / weighted sum
    out_bytes = (B * 4 * L + B) * 4
    bytes_accessed = sum(int(a.size) * a.dtype.itemsize for a in inputs) + out_bytes
    cost = pl.CostEstimate(flops=int(flops), transcendentals=5 * B,
                           bytes_accessed=int(bytes_accessed))

    vmem_spec = lambda: pl.BlockSpec(memory_space=pltpu.MemorySpace.VMEM)
    reps_packed, hazard = pl.pallas_call(
        functools.partial(_fused_net_kernel, m_length=L),
        out_shape=(jax.ShapeDtypeStruct((B, 4 * L), jnp.float32),
                   jax.ShapeDtypeStruct((B, 1), jnp.float32)),
        in_specs=[vmem_spec() for _ in inputs],
        out_specs=(vmem_spec(), vmem_spec()),
        cost_estimate=cost,
    )(*inputs)

    representation = {m: reps_packed[:, i * L:(i + 1) * L]
                      for i, m in enumerate(MODALITY_ORDER)}
    return {'hazard': hazard}, representation


# ----------------------------------------------------------------------------
if __name__ == "__main__":
    key = jax.random.PRNGKey(0)
    B = 2
    M_LENGTH = 32
    DIMS = {'clinical': 4, 'mRNA': 120, 'miRNA': 64, 'CNV': 200}   # small demo dims

    k_par, k_cat, k_cont, k_mrna, k_mirna, k_cnv = jax.random.split(key, 6)
    params = init_params(k_par, M_LENGTH, DIMS)
    prepared = prepare_params(params)

    x = {
        'clinical_categorical': jax.random.randint(k_cat, (B, 2), 0, 6, jnp.int32),
        'clinical_continuous': jax.random.normal(k_cont, (B, 2), jnp.float32),
        'mRNA': jax.random.normal(k_mrna, (B, DIMS['mRNA']), jnp.float32),
        'miRNA': jax.random.normal(k_mirna, (B, DIMS['miRNA']), jnp.float32),
        'CNV': jax.random.normal(k_cnv, (B, DIMS['CNV']), jnp.float32),
    }

    out, reps = net_forward(prepared, x)
    hazard = jax.block_until_ready(out['hazard'])
    assert hazard.shape == (B, 1)
    assert bool(jnp.all((hazard >= 0.0) & (hazard <= 1.0)))
    for m in MODALITY_ORDER:
        assert reps[m].shape == (B, M_LENGTH)
    print("KERNEL_OK")
</pallas_src>

<mosaic_0001>
module attributes {stable_mosaic.version = 11 : i64} {
  func.func @_fused_net_kernel(%arg0: memref<2x2xi32, #tpu.memory_space<vmem>>, %arg1: memref<2x2xf32, #tpu.memory_space<vmem>>, %arg2: memref<2x120xf32, #tpu.memory_space<vmem>>, %arg3: memref<2x64xf32, #tpu.memory_space<vmem>>, %arg4: memref<2x200xf32, #tpu.memory_space<vmem>>, %arg5: memref<8x2xf32, #tpu.memory_space<vmem>>, %arg6: memref<6x2xf32, #tpu.memory_space<vmem>>, %arg7: memref<2x32xf32, #tpu.memory_space<vmem>>, %arg8: memref<2x32xf32, #tpu.memory_space<vmem>>, %arg9: memref<2x32xf32, #tpu.memory_space<vmem>>, %arg10: memref<1x32xf32, #tpu.memory_space<vmem>>, %arg11: memref<120x32xf32, #tpu.memory_space<vmem>>, %arg12: memref<1x32xf32, #tpu.memory_space<vmem>>, %arg13: memref<64x32xf32, #tpu.memory_space<vmem>>, %arg14: memref<1x32xf32, #tpu.memory_space<vmem>>, %arg15: memref<200x32xf32, #tpu.memory_space<vmem>>, %arg16: memref<1x32xf32, #tpu.memory_space<vmem>>, %arg17: memref<32x1xf32, #tpu.memory_space<vmem>>, %arg18: memref<1x1xf32, #tpu.memory_space<vmem>>, %arg19: memref<32x1xf32, #tpu.memory_space<vmem>>, %arg20: memref<1x1xf32, #tpu.memory_space<vmem>>, %arg21: memref<2x128xf32, #tpu.memory_space<vmem>>, %arg22: memref<2x1xf32, #tpu.memory_space<vmem>>) attributes {dimension_semantics = [], scalar_prefetch = 0 : i64, scratch_operands = 0 : i64, tpu.core_type = #tpu.core_type<tc>} {
    %c0 = arith.constant 0 : index
    %c0_0 = arith.constant 0 : index
    %0 = vector.load %arg0[%c0, %c0_0] : memref<2x2xi32, #tpu.memory_space<vmem>>, vector<2x2xi32>
    %1 = tpu.iota {dimensions = array<i32: 1>} : vector<2x8xi32>
    %2 = vector.extract_strided_slice %0 {offsets = [0, 0], sizes = [2, 1], strides = [1, 1]} : vector<2x2xi32> to vector<2x1xi32>
    %3 = vector.broadcast %2 : vector<2x1xi32> to vector<2x8xi32>
    %4 = arith.cmpi eq, %1, %3 : vector<2x8xi32>
    %5 = arith.extui %4 : vector<2x8xi1> to vector<2x8xi32>
    %6 = arith.sitofp %5 : vector<2x8xi32> to vector<2x8xf32>
    %7 = tpu.iota {dimensions = array<i32: 1>} : vector<2x6xi32>
    %8 = vector.extract_strided_slice %0 {offsets = [0, 1], sizes = [2, 1], strides = [1, 1]} : vector<2x2xi32> to vector<2x1xi32>
    %9 = vector.broadcast %8 : vector<2x1xi32> to vector<2x6xi32>
    %10 = arith.cmpi eq, %7, %9 : vector<2x6xi32>
    %11 = arith.extui %10 : vector<2x6xi1> to vector<2x6xi32>
    %12 = arith.sitofp %11 : vector<2x6xi32> to vector<2x6xf32>
    %c0_1 = arith.constant 0 : index
    %c0_2 = arith.constant 0 : index
    %13 = vector.load %arg5[%c0_1, %c0_2] : memref<8x2xf32, #tpu.memory_space<vmem>>, vector<8x2xf32>
    %cst = arith.constant dense<0.000000e+00> : vector<2x2xf32>
    %14 = tpu.matmul %6, %13, %cst {dimension_numbers = #tpu.dot_dimension_numbers<[1], [0], [0], [1], [0, 0, 1, 1], [], []>} : vector<2x8xf32>, vector<8x2xf32>, vector<2x2xf32> -> vector<2x2xf32>
    %c0_3 = arith.constant 0 : index
    %c0_4 = arith.constant 0 : index
    %15 = vector.load %arg6[%c0_3, %c0_4] : memref<6x2xf32, #tpu.memory_space<vmem>>, vector<6x2xf32>
    %cst_5 = arith.constant dense<0.000000e+00> : vector<2x2xf32>
    %16 = tpu.matmul %12, %15, %cst_5 {dimension_numbers = #tpu.dot_dimension_numbers<[1], [0], [0], [1], [0, 0, 1, 1], [], []>} : vector<2x6xf32>, vector<6x2xf32>, vector<2x2xf32> -> vector<2x2xf32>
    %c0_6 = arith.constant 0 : index
    %c0_7 = arith.constant 0 : index
    %17 = vector.load %arg7[%c0_6, %c0_7] : memref<2x32xf32, #tpu.memory_space<vmem>>, vector<2x32xf32>
    %cst_8 = arith.constant dense<0.000000e+00> : vector<2x32xf32>
    %18 = tpu.matmul %14, %17, %cst_8 {dimension_numbers = #tpu.dot_dimension_numbers<[1], [0], [0], [1], [0, 0, 1, 1], [], []>} : vector<2x2xf32>, vector<2x32xf32>, vector<2x32xf32> -> vector<2x32xf32>
    %c0_9 = arith.constant 0 : index
    %c0_10 = arith.constant 0 : index
    %19 = vector.load %arg8[%c0_9, %c0_10] : memref<2x32xf32, #tpu.memory_space<vmem>>, vector<2x32xf32>
    %cst_11 = arith.constant dense<0.000000e+00> : vector<2x32xf32>
    %20 = tpu.matmul %16, %19, %cst_11 {dimension_numbers = #tpu.dot_dimension_numbers<[1], [0], [0], [1], [0, 0, 1, 1], [], []>} : vector<2x2xf32>, vector<2x32xf32>, vector<2x32xf32> -> vector<2x32xf32>
    %21 = arith.addf %18, %20 : vector<2x32xf32>
    %c0_12 = arith.constant 0 : index
    %c0_13 = arith.constant 0 : index
    %22 = vector.load %arg1[%c0_12, %c0_13] : memref<2x2xf32, #tpu.memory_space<vmem>>, vector<2x2xf32>
    %c0_14 = arith.constant 0 : index
    %c0_15 = arith.constant 0 : index
    %23 = vector.load %arg9[%c0_14, %c0_15] : memref<2x32xf32, #tpu.memory_space<vmem>>, vector<2x32xf32>
    %cst_16 = arith.constant dense<0.000000e+00> : vector<2x32xf32>
    %24 = tpu.matmul %22, %23, %cst_16 {dimension_numbers = #tpu.dot_dimension_numbers<[1], [0], [0], [1], [0, 0, 1, 1], [], []>} : vector<2x2xf32>, vector<2x32xf32>, vector<2x32xf32> -> vector<2x32xf32>
    %25 = arith.addf %21, %24 : vector<2x32xf32>
    %c0_17 = arith.constant 0 : index
    %c0_18 = arith.constant 0 : index
    %26 = vector.load %arg10[%c0_17, %c0_18] : memref<1x32xf32, #tpu.memory_space<vmem>>, vector<1x32xf32>
    %27 = vector.broadcast %26 : vector<1x32xf32> to vector<2x32xf32>
    %28 = arith.addf %25, %27 : vector<2x32xf32>
    %cst_19 = arith.constant 0.000000e+00 : f32
    %29 = vector.broadcast %cst_19 : f32 to vector<2x32xf32>
    %30 = arith.maximumf %28, %29 : vector<2x32xf32>
    %c0_20 = arith.constant 0 : index
    %c0_21 = arith.constant 0 : index
    %31 = vector.load %arg2[%c0_20, %c0_21] : memref<2x120xf32, #tpu.memory_space<vmem>>, vector<2x120xf32>
    %c0_22 = arith.constant 0 : index
    %c0_23 = arith.constant 0 : index
    %32 = vector.load %arg11[%c0_22, %c0_23] : memref<120x32xf32, #tpu.memory_space<vmem>>, vector<120x32xf32>
    %cst_24 = arith.constant dense<0.000000e+00> : vector<2x32xf32>
    %33 = tpu.matmul %31, %32, %cst_24 {dimension_numbers = #tpu.dot_dimension_numbers<[1], [0], [0], [1], [0, 0, 1, 1], [], []>} : vector<2x120xf32>, vector<120x32xf32>, vector<2x32xf32> -> vector<2x32xf32>
    %c0_25 = arith.constant 0 : index
    %c0_26 = arith.constant 0 : index
    %34 = vector.load %arg12[%c0_25, %c0_26] : memref<1x32xf32, #tpu.memory_space<vmem>>, vector<1x32xf32>
    %35 = vector.broadcast %34 : vector<1x32xf32> to vector<2x32xf32>
    %36 = arith.addf %33, %35 : vector<2x32xf32>
    %cst_27 = arith.constant 0.000000e+00 : f32
    %37 = vector.broadcast %cst_27 : f32 to vector<2x32xf32>
    %38 = arith.maximumf %36, %37 : vector<2x32xf32>
    %c0_28 = arith.constant 0 : index
    %c0_29 = arith.constant 0 : index
    %39 = vector.load %arg3[%c0_28, %c0_29] : memref<2x64xf32, #tpu.memory_space<vmem>>, vector<2x64xf32>
    %c0_30 = arith.constant 0 : index
    %c0_31 = arith.constant 0 : index
    %40 = vector.load %arg13[%c0_30, %c0_31] : memref<64x32xf32, #tpu.memory_space<vmem>>, vector<64x32xf32>
    %cst_32 = arith.constant dense<0.000000e+00> : vector<2x32xf32>
    %41 = tpu.matmul %39, %40, %cst_32 {dimension_numbers = #tpu.dot_dimension_numbers<[1], [0], [0], [1], [0, 0, 1, 1], [], []>} : vector<2x64xf32>, vector<64x32xf32>, vector<2x32xf32> -> vector<2x32xf32>
    %c0_33 = arith.constant 0 : index
    %c0_34 = arith.constant 0 : index
    %42 = vector.load %arg14[%c0_33, %c0_34] : memref<1x32xf32, #tpu.memory_space<vmem>>, vector<1x32xf32>
    %43 = vector.broadcast %42 : vector<1x32xf32> to vector<2x32xf32>
    %44 = arith.addf %41, %43 : vector<2x32xf32>
    %cst_35 = arith.constant 0.000000e+00 : f32
    %45 = vector.broadcast %cst_35 : f32 to vector<2x32xf32>
    %46 = arith.maximumf %44, %45 : vector<2x32xf32>
    %c0_36 = arith.constant 0 : index
    %c0_37 = arith.constant 0 : index
    %47 = vector.load %arg4[%c0_36, %c0_37] : memref<2x200xf32, #tpu.memory_space<vmem>>, vector<2x200xf32>
    %c0_38 = arith.constant 0 : index
    %c0_39 = arith.constant 0 : index
    %48 = vector.load %arg15[%c0_38, %c0_39] : memref<200x32xf32, #tpu.memory_space<vmem>>, vector<200x32xf32>
    %cst_40 = arith.constant dense<0.000000e+00> : vector<2x32xf32>
    %49 = tpu.matmul %47, %48, %cst_40 {dimension_numbers = #tpu.dot_dimension_numbers<[1], [0], [0], [1], [0, 0, 1, 1], [], []>} : vector<2x200xf32>, vector<200x32xf32>, vector<2x32xf32> -> vector<2x32xf32>
    %c0_41 = arith.constant 0 : index
    %c0_42 = arith.constant 0 : index
    %50 = vector.load %arg16[%c0_41, %c0_42] : memref<1x32xf32, #tpu.memory_space<vmem>>, vector<1x32xf32>
    %51 = vector.broadcast %50 : vector<1x32xf32> to vector<2x32xf32>
    %52 = arith.addf %49, %51 : vector<2x32xf32>
    %cst_43 = arith.constant 0.000000e+00 : f32
    %53 = vector.broadcast %cst_43 : f32 to vector<2x32xf32>
    %54 = arith.maximumf %52, %53 : vector<2x32xf32>
    %c0_44 = arith.constant 0 : index
    %c0_45 = arith.constant 0 : index
    %55 = vector.load %arg17[%c0_44, %c0_45] : memref<32x1xf32, #tpu.memory_space<vmem>>, vector<32x1xf32>
    %c0_46 = arith.constant 0 : index
    %c0_47 = arith.constant 0 : index
    %56 = vector.load %arg18[%c0_46, %c0_47] : memref<1x1xf32, #tpu.memory_space<vmem>>, vector<1x1xf32>
    %cst_48 = arith.constant dense<0.000000e+00> : vector<2x1xf32>
    %57 = tpu.matmul %30, %55, %cst_48 {dimension_numbers = #tpu.dot_dimension_numbers<[1], [0], [0], [1], [0, 0, 1, 1], [], []>} : vector<2x32xf32>, vector<32x1xf32>, vector<2x1xf32> -> vector<2x1xf32>
    %58 = vector.broadcast %56 : vector<1x1xf32> to vector<2x1xf32>
    %59 = arith.addf %57, %58 : vector<2x1xf32>
    %cst_49 = arith.constant dense<0.000000e+00> : vector<2x1xf32>
    %60 = tpu.matmul %38, %55, %cst_49 {dimension_numbers = #tpu.dot_dimension_numbers<[1], [0], [0], [1], [0, 0, 1, 1], [], []>} : vector<2x32xf32>, vector<32x1xf32>, vector<2x1xf32> -> vector<2x1xf32>
    %61 = vector.broadcast %56 : vector<1x1xf32> to vector<2x1xf32>
    %62 = arith.addf %60, %61 : vector<2x1xf32>
    %cst_50 = arith.constant dense<0.000000e+00> : vector<2x1xf32>
    %63 = tpu.matmul %46, %55, %cst_50 {dimension_numbers = #tpu.dot_dimension_numbers<[1], [0], [0], [1], [0, 0, 1, 1], [], []>} : vector<2x32xf32>, vector<32x1xf32>, vector<2x1xf32> -> vector<2x1xf32>
    %64 = vector.broadcast %56 : vector<1x1xf32> to vector<2x1xf32>
    %65 = arith.addf %63, %64 : vector<2x1xf32>
    %cst_51 = arith.constant dense<0.000000e+00> : vector<2x1xf32>
    %66 = tpu.matmul %54, %55, %cst_51 {dimension_numbers = #tpu.dot_dimension_numbers<[1], [0], [0], [1], [0, 0, 1, 1], [], []>} : vector<2x32xf32>, vector<32x1xf32>, vector<2x1xf32> -> vector<2x1xf32>
    %67 = vector.broadcast %56 : vector<1x1xf32> to vector<2x1xf32>
    %68 = arith.addf %66, %67 : vector<2x1xf32>
    %69 = arith.maximumf %59, %62 : vector<2x1xf32>
    %70 = arith.maximumf %69, %65 : vector<2x1xf32>
    %71 = arith.maximumf %70, %68 : vector<2x1xf32>
    %72 = arith.subf %59, %71 : vector<2x1xf32>
    %73 = math.exp %72 : vector<2x1xf32>
    %74 = arith.subf %62, %71 : vector<2x1xf32>
    %75 = math.exp %74 : vector<2x1xf32>
    %76 = arith.subf %65, %71 : vector<2x1xf32>
    %77 = math.exp %76 : vector<2x1xf32>
    %78 = arith.subf %68, %71 : vector<2x1xf32>
    %79 = math.exp %78 : vector<2x1xf32>
    %80 = arith.addf %73, %75 : vector<2x1xf32>
    %81 = arith.addf %80, %77 : vector<2x1xf32>
    %82 = arith.addf %81, %79 : vector<2x1xf32>
    %cst_52 = arith.constant 1.000000e+00 : f32
    %83 = vector.broadcast %cst_52 : f32 to vector<2x1xf32>
    %84 = arith.divf %83, %82 : vector<2x1xf32>
    %85 = arith.mulf %73, %84 : vector<2x1xf32>
    %86 = vector.broadcast %85 : vector<2x1xf32> to vector<2x32xf32>
    %87 = arith.mulf %86, %30 : vector<2x32xf32>
    %88 = arith.mulf %75, %84 : vector<2x1xf32>
    %89 = vector.broadcast %88 : vector<2x1xf32> to vector<2x32xf32>
    %90 = arith.mulf %89, %38 : vector<2x32xf32>
    %91 = arith.addf %87, %90 : vector<2x32xf32>
    %92 = arith.mulf %77, %84 : vector<2x1xf32>
    %93 = vector.broadcast %92 : vector<2x1xf32> to vector<2x32xf32>
    %94 = arith.mulf %93, %46 : vector<2x32xf32>
    %95 = arith.addf %91, %94 : vector<2x32xf32>
    %96 = arith.mulf %79, %84 : vector<2x1xf32>
    %97 = vector.broadcast %96 : vector<2x1xf32> to vector<2x32xf32>
    %98 = arith.mulf %97, %54 : vector<2x32xf32>
    %99 = arith.addf %95, %98 : vector<2x32xf32>
    %c0_53 = arith.constant 0 : index
    %c0_54 = arith.constant 0 : index
    %100 = vector.load %arg19[%c0_53, %c0_54] : memref<32x1xf32, #tpu.memory_space<vmem>>, vector<32x1xf32>
    %cst_55 = arith.constant dense<0.000000e+00> : vector<2x1xf32>
    %101 = tpu.matmul %99, %100, %cst_55 {dimension_numbers = #tpu.dot_dimension_numbers<[1], [0], [0], [1], [0, 0, 1, 1], [], []>} : vector<2x32xf32>, vector<32x1xf32>, vector<2x1xf32> -> vector<2x1xf32>
    %c0_56 = arith.constant 0 : index
    %c0_57 = arith.constant 0 : index
    %102 = vector.load %arg20[%c0_56, %c0_57] : memref<1x1xf32, #tpu.memory_space<vmem>>, vector<1x1xf32>
    %103 = vector.broadcast %102 : vector<1x1xf32> to vector<2x1xf32>
    %104 = arith.addf %101, %103 : vector<2x1xf32>
    %105 = arith.negf %104 : vector<2x1xf32>
    %106 = math.exp %105 : vector<2x1xf32>
    %cst_58 = arith.constant 1.000000e+00 : f32
    %107 = vector.broadcast %cst_58 : f32 to vector<2x1xf32>
    %108 = arith.addf %107, %106 : vector<2x1xf32>
    %109 = arith.divf %107, %108 : vector<2x1xf32>
    %c0_59 = arith.constant 0 : index
    %c0_60 = arith.constant 0 : index
    %110 = vector.load %arg22[%c0_59, %c0_60] : memref<2x1xf32, #tpu.memory_space<vmem>>, vector<2x1xf32>
    tpu.vector_store %arg22[%c0_59, %c0_60], %109 {strides = array<i32>} : memref<2x1xf32, #tpu.memory_space<vmem>>, vector<2x1xf32>,
    %c0_61 = arith.constant 0 : index
    %c0_62 = arith.constant 0 : index
    %111 = vector.load %arg21[%c0_61, %c0_62] : memref<2x128xf32, #tpu.memory_space<vmem>>, vector<2x32xf32>
    tpu.vector_store %arg21[%c0_61, %c0_62], %30 {strides = array<i32>} : memref<2x128xf32, #tpu.memory_space<vmem>>, vector<2x32xf32>,
    %c0_63 = arith.constant 0 : index
    %c32 = arith.constant 32 : index
    %112 = vector.load %arg21[%c0_63, %c32] : memref<2x128xf32, #tpu.memory_space<vmem>>, vector<2x32xf32>
    tpu.vector_store %arg21[%c0_63, %c32], %38 {strides = array<i32>} : memref<2x128xf32, #tpu.memory_space<vmem>>, vector<2x32xf32>,
    %c0_64 = arith.constant 0 : index
    %c64 = arith.constant 64 : index
    %113 = vector.load %arg21[%c0_64, %c64] : memref<2x128xf32, #tpu.memory_space<vmem>>, vector<2x32xf32>
    tpu.vector_store %arg21[%c0_64, %c64], %46 {strides = array<i32>} : memref<2x128xf32, #tpu.memory_space<vmem>>, vector<2x32xf32>,
    %c0_65 = arith.constant 0 : index
    %c96 = arith.constant 96 : index
    %114 = vector.load %arg21[%c0_65, %c96] : memref<2x128xf32, #tpu.memory_space<vmem>>, vector<2x32xf32>
    tpu.vector_store %arg21[%c0_65, %c96], %54 {strides = array<i32>} : memref<2x128xf32, #tpu.memory_space<vmem>>, vector<2x32xf32>,
    return
  }
}

</mosaic_0001>

<bundles_post_ra>
// kernel: tpu_custom_call.1
= control target key start
LH: loop header
LB: loop body
LE: loop exit
PB: predicated region body
PF: predicated region fallthrough
CT: control target
= control target key end

     0   :  { %s2016_s0 = inlined_call_operand.vmem [shape: s32[2,2], index: 0, kind: input, shape index: {}]   ;;  %s2017_s1 = inlined_call_operand.vmem [shape: f32[2,2], index: 1, kind: input, shape index: {}]   ;;  %s2018_s2 = inlined_call_operand.vmem [shape: f32[2,120], index: 2, kind: input, shape index: {}]   ;;  %s2019_s3 = inlined_call_operand.vmem [shape: f32[2,64], index: 3, kind: input, shape index: {}]   ;;  %s2020_s4 = inlined_call_operand.vmem [shape: f32[2,200], index: 4, kind: input, shape index: {}]   ;;  %s2021_s5 = inlined_call_operand.vmem [shape: f32[8,2], index: 5, kind: input, shape index: {}]   ;;  %s2022_s6 = inlined_call_operand.vmem [shape: f32[6,2], index: 6, kind: input, shape index: {}]   ;;  %s2023_s7 = inlined_call_operand.vmem [shape: f32[2,32], index: 7, kind: input, shape index: {}]   ;;  %s2024_s8 = inlined_call_operand.vmem [shape: f32[2,32], index: 8, kind: input, shape index: {}]   ;;  %s2025_s9 = inlined_call_operand.vmem [shape: f32[2,32], index: 9, kind: input, shape index: {}]   ;;  %s2026_s10 = inlined_call_operand.vmem [shape: f32[1,32], index: 10, kind: input, shape index: {}]   ;;  %s2027_s11 = inlined_call_operand.vmem [shape: f32[120,32], index: 11, kind: input, shape index: {}]   ;;  %s2028_s12 = inlined_call_operand.vmem [shape: f32[1,32], index: 12, kind: input, shape index: {}]   ;;  %s2029_s13 = inlined_call_operand.vmem [shape: f32[64,32], index: 13, kind: input, shape index: {}]   ;;  %s2030_s14 = inlined_call_operand.vmem [shape: f32[1,32], index: 14, kind: input, shape index: {}]   ;;  %s2031_s15 = inlined_call_operand.vmem [shape: f32[200,32], index: 15, kind: input, shape index: {}]   ;;  %s2032_s16 = inlined_call_operand.vmem [shape: f32[1,32], index: 16, kind: input, shape index: {}]   ;;  %s2033_s17 = inlined_call_operand.vmem [shape: f32[32,1], index: 17, kind: input, shape index: {}]   ;;  %s2034_s18 = inlined_call_operand.<no memory space> [shape: f32[1,1], index: 18, kind: input, shape index: {}]   ;;  %s2035_s19 = inlined_call_operand.vmem [shape: f32[32,1], index: 19, kind: input, shape index: {}]   ;;  %s2036_s21 = inlined_call_operand.hbm [shape: f32[2,128], index: 21, kind: output, shape index: {0}]   ;;  %s2037_s22 = inlined_call_operand.vmem [shape: f32[2,1], index: 22, kind: output, shape index: {1}]   ;;  %s2038_s20 = inlined_call_operand.<no memory space> [shape: f32[1,1], index: 20, kind: input, shape index: {}]  }
   0x1   :  { %2039 = sst [smem:[#allocation7_spill]] %s2016_s0  ;;  %v28_v0 = vstv %s2034_s18  ;;  %v30_v1 = vstv %s2038_s20 }
   0x2   :  { %2040 = sst [smem:[#allocation8_spill]] %s2017_s1  ;;  %29 = vst [vmem:[#allocation2] sm:$0x1] %v28_v0  ;;  %31 = vst [vmem:[#allocation3] sm:$0x1] %v30_v1 }
   0x3   :  { %2041 = sst [smem:[#allocation9_spill]] %s2018_s2 }
   0x4   :  { %2042 = sst [smem:[#allocation10_spill]] %s2019_s3 }
   0x5   :  { %2043 = sst [smem:[#allocation11_spill]] %s2020_s4 }
   0x6   :  { %2044 = sst [smem:[#allocation12_spill]] %s2021_s5 }
   0x7   :  { %2045 = sst [smem:[#allocation13_spill]] %s2022_s6 }
   0x8   :  { %s2046_s23 = sld [smem:[#allocation7_spill]]  ;;  %v1542_v3 = vmov 1   ;;  %v1543_v4 = vmov 0.0   ;;  %vm170_vm0 = vcmask 1045504  }
   0x9   :  { %1503 = vset.pattern.permute.xlu0 %v1542_v3  ;;  %1368 = vmatprep.subr.mxu1 %v1543_v4  ;;  %s2047_s24 = sld [smem:[#allocation13_spill]] }
   0xe   :  { %v75_v2 = vld [vmem:[%s2046_s23] sm:$0x3] }
   0xf   :  { %v165_v5 = vld [vmem:[%s2047_s24] sm:$0x3f]  ;;  %85 = vperm.xlu0 %1503, %v75_v2  }
  0x10   :  { %1369 = vmatpush3.msk.msra.mxu1 %vm170_vm0, %v165_v5 }
  0x11   :  { %32 = vsyncpa [#allocation5], 0  ;;  %vm1544_vm1 = vmmov 0   ;;  %1363 = vmatprep.subr.mxu0 %v1543_v4  ;;  %s2048_s6 = sld [smem:[#allocation12_spill]]  ;;  %1378 = vmatprep.subr.mxu1 %v1543_v4  ;;  %v1545_v7 = vmov 0   ;;  %v76_v8 = vlaneseq  ;;  %vm166_vm2 = vcmask 48128  }
  0x12   :  { %1370 = vmatprep.mubr.msk.f32.mxu1 %vm1544_vm1, %v1543_v4  ;;  %1365 = vmatprep.mubr.msk.f32.mxu0 %vm1544_vm1, %v1543_v4  ;;  %vm91_vm4 = vcmask 64512   ;;  %v245_v13 = vld [vmem:[%s2024_s8] sm:$0x3]  ;;  %vm250_vm6 = vcmask 1041408   ;;  %vm246_vm7 = vcmask 15360   ;;  %s2049_s30 = sld [smem:[#allocation8_spill]] }
  0x13   :  { %1504 = vset.pattern.permute.xlu0 %v1545_v7  ;;  %1505 = vset.pattern.permute.xlu1 %v1545_v7  ;;  %v77_v9 = vand.u32 127, %v76_v8  ;;  %v244_v15 = vld [vmem:[%s2023_s7] sm:$0x3]  ;;  %v594_v20 = vld [vmem:[%s2029_s13 + $0x38] sm:$0xff]  ;;  %v503_v21 = vld [vmem:[%s2027_s11 + $0x70] sm:$0xff]  ;;  %s2050_s27 = sld [smem:[#allocation10_spill]] }
  0x14   :  { %79 = vperm.xlu0 %1504, %v75_v2   ;;  %v401_v16 = vld [vmem:[%s2025_s9] sm:$0x3]  ;;  %v593_v23 = vld [vmem:[%s2029_s13 + $0x30] sm:$0xff]  ;;  %v502_v24 = vld [vmem:[%s2027_s11 + $0x68] sm:$0xff]  ;;  %vm602_vm8 = vcmask 523264   ;;  %s2052_s5 = sld [smem:[#allocation9_spill]] }
  0x15   :  { %v592_v25 = vld [vmem:[%s2029_s13 + $0x28] sm:$0xff]  ;;  %v501_v27 = vld [vmem:[%s2027_s11 + $0x60] sm:$0xff]  ;;  %v500_v29 = vld [vmem:[%s2027_s11 + $0x58] sm:$0xff]  ;;  %vm511_vm9 = vcmask 982016   ;;  %vm720_vm10 = vcmask 588800   ;;  %vm805_vm11 = vcmask 261120  }
  0x16   :  { %v591_v28 = vld [vmem:[%s2029_s13 + $0x20] sm:$0xff]  ;;  %v590_v30 = vld [vmem:[%s2029_s13 + $0x18] sm:$0xff]  ;;  %v499_v31 = vld [vmem:[%s2027_s11 + $0x50] sm:$0xff]  ;;  %vm1241_vm12 = vcmask 254976   ;;  %s1547_s8 = smov 32   ;;  %s1548_s28 = smov 96  }
  0x17   :  { %v90_v6 = vld [vmem:[%s2048_s6] sm:$0xff]  ;;  %v589_v32 = vld [vmem:[%s2029_s13 + $0x10] sm:$0xff]  ;;  %v498_v33 = vld [vmem:[%s2027_s11 + $0x48] sm:$0xff]  ;;  %s1546_s6 = smov 64   ;;  %vm1246_vm13 = vcmask 517376   ;;  %vm1251_vm14 = vcmask 779776  }
  0x18   :  { %1364 = vmatpush3.msra.mxu0 %v90_v6  ;;  %v400_v19 = vld [vmem:[%s2049_s30] sm:$0x3]  ;;  %v588_v34 = vld [vmem:[%s2029_s13 + $0x8] sm:$0xff]  ;;  %v496_v37 = vld [vmem:[%s2027_s11 + $0x38] sm:$0xff]  ;;  %s2051_s30 = sld [smem:[#allocation11_spill]]  ;;  %vm1256_vm15 = vcmask 1042176  }
  0x19   :  { %1373 = vmatprep.subr.mxu0 %v1543_v4  ;;  %v497_v35 = vld [vmem:[%s2027_s11 + $0x40] sm:$0xff]  ;;  %v693_v39 = vld [vmem:[%s2031_s15 + $0x78] sm:$0xff]  ;;  %v495_v40 = vld [vmem:[%s2027_s11 + $0x30] sm:$0xff] }
  0x1a   :  { %v587_v36 = vld [vmem:[%s2029_s13] sm:$0xff]  ;;  %v692_v41 = vld [vmem:[%s2031_s15 + $0x70] sm:$0xff]  ;;  %v494_v42 = vld [vmem:[%s2027_s11 + $0x28] sm:$0xff] }
  0x1b   :  { %v586_v38 = vld [vmem:[%s2050_s27] sm:$0x3]  ;;  %v691_v43 = vld [vmem:[%s2031_s15 + $0x68] sm:$0xff]  ;;  %v492_v46 = vld [vmem:[%s2027_s11 + $0x18] sm:$0xff] }
  0x1c   :  { %v493_v44 = vld [vmem:[%s2027_s11 + $0x20] sm:$0xff]  ;;  %v689_v47 = vld [vmem:[%s2031_s15 + $0x58] sm:$0xff]  ;;  %v491_v48 = vld [vmem:[%s2027_s11 + $0x10] sm:$0xff] }
  0x1d   :  { %v690_v45 = vld [vmem:[%s2031_s15 + $0x60] sm:$0xff]  ;;  %v688_v49 = vld [vmem:[%s2031_s15 + $0x50] sm:$0xff]  ;;  %v490_v50 = vld [vmem:[%s2027_s11 + $0x8] sm:$0xff] }
  0x1e   :  { %v1827_v51 = vld.sshfl [vmem:[%s2051_s30] sm:$0x33 pattern:$0x76325410]  ;;  %v687_v52 = vld [vmem:[%s2031_s15 + $0x48] sm:$0xff]  ;;  %v685_v57 = vld [vmem:[%s2031_s15 + $0x38] sm:$0xff] }
  0x1f   :  { %v489_v53 = vld [vmem:[%s2027_s11] sm:$0xff]  ;;  %v718_v55 = vcombine.high %v1827_v51, %v1827_v51  ;;  %v684_v58 = vld [vmem:[%s2031_s15 + $0x30] sm:$0xff]  ;;  %v683_v59 = vld [vmem:[%s2031_s15 + $0x28] sm:$0xff] }
  0x20   :  { %v488_v54 = vld [vmem:[%s2052_s5] sm:$0x3]  ;;  %v681_v61 = vld [vmem:[%s2031_s15 + $0x18] sm:$0xff]  ;;  %v680_v62 = vld [vmem:[%s2031_s15 + $0x10] sm:$0xff] }
  0x21   :  { %v686_v56 = vld [vmem:[%s2031_s15 + $0x40] sm:$0xff]  ;;  %v679_v63 = vld [vmem:[%s2031_s15 + $0x8] sm:$0xff]  ;;  %v701_v2 = vld [vmem:[%s2031_s15 + $0xb8] sm:$0xff] }
  0x22   :  { %v682_v60 = vld [vmem:[%s2031_s15 + $0x20] sm:$0xff]  ;;  %v700_v3 = vld [vmem:[%s2031_s15 + $0xb0] sm:$0xff]  ;;  %v699_v5 = vld [vmem:[%s2031_s15 + $0xa8] sm:$0xff] }
  0x23   :  { %v678_v0 = vld [vmem:[%s2031_s15] sm:$0xff]  ;;  %v697_v7 = vld [vmem:[%s2031_s15 + $0x98] sm:$0xff]  ;;  %v696_v8 = vld [vmem:[%s2031_s15 + $0x90] sm:$0xff] }
  0x24   :  { %v702_v1 = vld [vmem:[%s2031_s15 + $0xc0] sm:$0xff] }
  0x25   :  { %v698_v6 = vld [vmem:[%s2031_s15 + $0xa0] sm:$0xff] }
  0x8a   :  { %v86_v10 = vpop.permute.xlu0 %85 }
  0x8b   :  { %vm87_vm3 = vcmp.eq.s32.totalorder %v77_v9, %v86_v10  ;;  %v694_v10 = vld [vmem:[%s2031_s15 + $0x80] sm:$0xff] }
  0x8c   :  { %v1277_v11 = vsel %vm87_vm3, 1.0, %v1543_v4 }
  0x8d   :  { %1371 = vmatmul.mubr.msk.f32.vlgmr.msra.gmra.mxu1 %vm166_vm2, %v1277_v11  ;;  %v797_v11 = vld [vmem:[%s2033_s17 + $0x18] sm:$0xff] }
  0x8e   :  { %1380 = vmatprep.mubr.msk.f32.mxu1 %vm1544_vm1, %v1543_v4  ;;  %1379 = vmatpush3.msk.msra.mxu1 %vm250_vm6, %v244_v15 }
  0x8f   :  { %v80_v12 = vpop.permute.xlu0 %79  ;;  %1388 = vmatprep.subr.mxu1 %v1543_v4 }
  0x90   :  { %vm81_vm5 = vcmp.eq.s32.totalorder %v77_v9, %v80_v12  ;;  %v695_v9 = vld [vmem:[%s2031_s15 + $0x88] sm:$0xff]  ;;  %v796_v12 = vld [vmem:[%s2033_s17 + $0x10] sm:$0xff] }
  0x91   :  { %v1276_v14 = vsel %vm81_vm5, 1.0, %v1543_v4 }
  0x92   :  { %1366 = vmatmul.mubr.msk.f32.vlgmr.msra.gmra.mxu0 %vm91_vm4, %v1276_v14  ;;  %v794_v14 = vld [vmem:[%s2033_s17] sm:$0xff] }
  0x93   :  { %1374 = vmatpush3.msk.msra.mxu0 %vm250_vm6, %v245_v13  ;;  %1375 = vmatprep.mubr.msk.f32.mxu0 %vm1544_vm1, %v1543_v4  ;;  %v795_v13 = vld [vmem:[%s2033_s17 + $0x8] sm:$0xff] }
  0x94   :  { %1383 = vmatprep.subr.mxu0 %v1543_v4 }
 0x14d   :  { %v240_v17 = vpop.f32.mrf.mxu1 }
 0x14e   :  { %1376 = vmatmul.mubr.msk.f32.vlgmr.msra.gmra.mxu0 %vm246_vm7, %v240_v17 }
 0x14f   :  { %1384 = vmatpush3.msk.msra.mxu0 %vm250_vm6, %v401_v16  ;;  %v1372_v18 = vpop.f32.mrf.mxu1  ;;  %1385 = vmatprep.mubr.msk.f32.mxu0 %vm1544_vm1, %v1543_v4 }
 0x150   :  { %1421 = vmatprep.subr.mxu0 %v1543_v4 }
 0x152   :  { %v161_v22 = vpop.f32.mrf.mxu0  ;;  %1386 = vmatmul.mubr.msk.f32.vlgmr.msra.gmra.mxu0 %vm246_vm7, %v400_v19 }
 0x153   :  { %1422 = vmatpush3.msra.mxu0 %v594_v20  ;;  %1381 = vmatmul.mubr.msk.f32.vlgmr.msra.gmra.mxu1 %vm246_vm7, %v161_v22 }
 0x154   :  { %1389 = vmatpush3.msra.mxu1 %v503_v21  ;;  %1423 = vmatprep.subr.mxu0 %v1543_v4  ;;  %v1367_v26 = vpop.f32.mrf.mxu0  ;;  %v1287_v21 = vld [vmem:[%s2026_s10] ss:$0 sm:$0xff] }
 0x155   :  { %1390 = vmatprep.subr.mxu1 %v1543_v4  ;;  %1424 = vmatpush3.msra.mxu0 %v593_v23 }
 0x156   :  { %1391 = vmatpush3.msra.mxu1 %v502_v24  ;;  %1425 = vmatprep.subr.mxu0 %v1543_v4 }
 0x157   :  { %1392 = vmatprep.subr.mxu1 %v1543_v4  ;;  %1426 = vmatpush3.msra.mxu0 %v592_v25 }
 0x158   :  { %1393 = vmatpush3.msra.mxu1 %v501_v27  ;;  %1427 = vmatprep.subr.mxu0 %v1543_v4 }
 0x159   :  { %1394 = vmatprep.subr.mxu1 %v1543_v4  ;;  %1428 = vmatpush3.msra.mxu0 %v591_v28  ;;  %v1288_v28 = vld [vmem:[%s2028_s12] ss:$0 sm:$0xff] }
 0x15a   :  { %1395 = vmatpush3.msra.mxu1 %v500_v29  ;;  %1429 = vmatprep.subr.mxu0 %v1543_v4 }
 0x15b   :  { %1396 = vmatprep.subr.mxu1 %v1543_v4  ;;  %1430 = vmatpush3.msra.mxu0 %v590_v30 }
 0x15c   :  { %1397 = vmatpush3.msra.mxu1 %v499_v31  ;;  %1431 = vmatprep.subr.mxu0 %v1543_v4 }
 0x15d   :  { %1398 = vmatprep.subr.mxu1 %v1543_v4  ;;  %1432 = vmatpush3.msra.mxu0 %v589_v32 }
 0x15e   :  { %1399 = vmatpush3.msra.mxu1 %v498_v33  ;;  %1433 = vmatprep.subr.mxu0 %v1543_v4  ;;  %v1290_v33 = vld [vmem:[%s2030_s14] ss:$0 sm:$0xff] }
 0x15f   :  { %1400 = vmatprep.subr.mxu1 %v1543_v4  ;;  %1434 = vmatpush3.msra.mxu0 %v588_v34 }
 0x160   :  { %1401 = vmatpush3.msra.mxu1 %v497_v35  ;;  %1435 = vmatprep.subr.mxu0 %v1543_v4 }
 0x161   :  { %1402 = vmatprep.subr.mxu1 %v1543_v4  ;;  %1436 = vmatpush3.msra.mxu0 %v587_v36  ;;  %v1292_v36 = vld [vmem:[%s2032_s16] ss:$0 sm:$0xff] }
 0x162   :  { %1437 = vmatprep.mubr.msk.f32.mxu0 %vm1544_vm1, %v1543_v4  ;;  %1403 = vmatpush3.msra.mxu1 %v496_v37 }
 0x163   :  { %1438 = vmatmul.mubr.msk.f32.vlgmr.msra.gmra.mxu0 %vm602_vm8, %v586_v38  ;;  %723 = vmatprep.subr.mxu0 %v1543_v4 }
 0x164   :  { %1404 = vmatprep.subr.mxu1 %v1543_v4  ;;  %724 = vmatpush1.msra.mxu0 %v693_v39 }
 0x165   :  { %1405 = vmatpush3.msra.mxu1 %v495_v40  ;;  %725 = vmatprep.subr.mxu0 %v1543_v4 }
 0x166   :  { %1406 = vmatprep.subr.mxu1 %v1543_v4  ;;  %726 = vmatpush1.msra.mxu0 %v692_v41 }
 0x167   :  { %1407 = vmatpush3.msra.mxu1 %v494_v42  ;;  %727 = vmatprep.subr.mxu0 %v1543_v4 }
 0x168   :  { %1408 = vmatprep.subr.mxu1 %v1543_v4  ;;  %728 = vmatpush1.msra.mxu0 %v691_v43 }
 0x169   :  { %1409 = vmatpush3.msra.mxu1 %v493_v44  ;;  %729 = vmatprep.subr.mxu0 %v1543_v4 }
 0x16a   :  { %1410 = vmatprep.subr.mxu1 %v1543_v4  ;;  %730 = vmatpush1.msra.mxu0 %v690_v45 }
 0x16b   :  { %1411 = vmatpush3.msra.mxu1 %v492_v46  ;;  %731 = vmatprep.subr.mxu0 %v1543_v4 }
 0x16c   :  { %1412 = vmatprep.subr.mxu1 %v1543_v4  ;;  %732 = vmatpush1.msra.mxu0 %v689_v47  ;;  %v1295_v47 = vld [vmem:[#allocation2] ss:$0 sm:$0xff] }
 0x16d   :  { %1413 = vmatpush3.msra.mxu1 %v491_v48  ;;  %733 = vmatprep.subr.mxu0 %v1543_v4 }
 0x16e   :  { %1414 = vmatprep.subr.mxu1 %v1543_v4  ;;  %734 = vmatpush1.msra.mxu0 %v688_v49 }
 0x16f   :  { %1415 = vmatpush3.msra.mxu1 %v490_v50  ;;  %735 = vmatprep.subr.mxu0 %v1543_v4 }
 0x170   :  { %1416 = vmatprep.subr.mxu1 %v1543_v4  ;;  %736 = vmatpush1.msra.mxu0 %v687_v52 }
 0x171   :  { %1417 = vmatpush3.msra.mxu1 %v489_v53  ;;  %1418 = vmatprep.mubr.msk.f32.mxu1 %vm1544_vm1, %v1543_v4 }
 0x172   :  { %737 = vmatprep.subr.mxu0 %v1543_v4  ;;  %1419 = vmatmul.mubr.msk.f32.vlgmr.msra.gmra.mxu1 %vm511_vm9, %v488_v54 }
 0x173   :  { %738 = vmatpush1.msra.mxu0 %v686_v56  ;;  %1294 = vmatprep.mubr.msk.f32.mxu0 %vm720_vm10, %v718_v55 }
 0x174   :  { %739 = vmatprep.subr.mxu0 %v1543_v4  ;;  %1440 = vmatprep.subr.mxu1 %v1543_v4 }
 0x175   :  { %740 = vmatpush1.msra.mxu0 %v685_v57  ;;  %1448 = vmatprep.mubr.msk.f32.mxu1 %vm1544_vm1, %v1543_v4 }
 0x176   :  { %741 = vmatprep.subr.mxu0 %v1543_v4  ;;  %1441 = vmatpush3.msra.mxu1 %v797_v11 }
 0x177   :  { %742 = vmatpush1.msra.mxu0 %v684_v58  ;;  %1442 = vmatprep.subr.mxu1 %v1543_v4 }
 0x178   :  { %743 = vmatprep.subr.mxu0 %v1543_v4  ;;  %1443 = vmatpush3.msra.mxu1 %v796_v12 }
 0x179   :  { %744 = vmatpush1.msra.mxu0 %v683_v59  ;;  %1444 = vmatprep.subr.mxu1 %v1543_v4 }
 0x17a   :  { %745 = vmatprep.subr.mxu0 %v1543_v4  ;;  %1445 = vmatpush3.msra.mxu1 %v795_v13 }
 0x17b   :  { %746 = vmatpush1.msra.mxu0 %v682_v60  ;;  %1446 = vmatprep.subr.mxu1 %v1543_v4 }
 0x17c   :  { %747 = vmatprep.subr.mxu0 %v1543_v4  ;;  %1447 = vmatpush3.msra.mxu1 %v794_v14 }
 0x17d   :  { %748 = vmatpush1.msra.mxu0 %v681_v61  ;;  %1451 = vmatprep.subr.mxu1 %v1543_v4 }
 0x17e   :  { %749 = vmatprep.subr.mxu0 %v1543_v4 }
 0x17f   :  { %750 = vmatpush1.msra.mxu0 %v680_v62 }
 0x180   :  { %751 = vmatprep.subr.mxu0 %v1543_v4 }
 0x181   :  { %752 = vmatpush1.msra.mxu0 %v679_v63 }
 0x182   :  { %753 = vmatprep.subr.mxu0 %v1543_v4 }
 0x183   :  { %754 = vmatpush1.msra.mxu0 %v678_v0 }
 0x184   :  { %769 = vmatprep.subr.mxu0 %v1543_v4 }
 0x185   :  { %770 = vmatpush2.msra.mxu0 %v702_v1 }
 0x186   :  { %771 = vmatprep.subr.mxu0 %v1543_v4 }
 0x187   :  { %772 = vmatpush2.msra.mxu0 %v701_v2 }
 0x188   :  { %773 = vmatprep.subr.mxu0 %v1543_v4 }
 0x189   :  { %774 = vmatpush2.msra.mxu0 %v700_v3 }
 0x18a   :  { %775 = vmatprep.subr.mxu0 %v1543_v4 }
 0x18b   :  { %776 = vmatpush2.msra.mxu0 %v699_v5 }
 0x18c   :  { %777 = vmatprep.subr.mxu0 %v1543_v4 }
 0x18d   :  { %778 = vmatpush2.msra.mxu0 %v698_v6 }
 0x18e   :  { %779 = vmatprep.subr.mxu0 %v1543_v4 }
 0x18f   :  { %780 = vmatpush2.msra.mxu0 %v697_v7 }
 0x190   :  { %781 = vmatprep.subr.mxu0 %v1543_v4 }
 0x191   :  { %782 = vmatpush2.msra.mxu0 %v696_v8 }
 0x192   :  { %783 = vmatprep.subr.mxu0 %v1543_v4 }
 0x193   :  { %784 = vmatpush2.msra.mxu0 %v695_v9 }
 0x194   :  { %785 = vmatprep.subr.mxu0 %v1543_v4 }
 0x195   :  { %786 = vmatpush2.msra.mxu0 %v694_v10 }
 0x196   :  { %788 = vmatmul.mubr.f32.vlgmr.msra.gmra.mxu0 %v1827_v51 }
 0x20e   :  { %v320_v15 = vpop.f32.mrf.mxu0 }
 0x210   :  { %v1377_v16 = vpop.f32.mrf.mxu0 }
 0x211   :  { %v1150_v16 = vld [vmem:[%s2035_s19 + $0x8] sm:$0xff] }
 0x212   :  { %v474_v17 = vpop.f32.mrf.mxu0 }
 0x213   :  { %v396_v18 = vpop.f32.mrf.mxu1 }
 0x214   :  { %v397_v19 = vadd.f32 %v396_v18, %v320_v15  ;;  %v1387_v20 = vpop.f32.mrf.mxu0  ;;  %v1151_v15 = vld [vmem:[%s2035_s19 + $0x10] sm:$0xff] }
 0x215   :  { %v1382_v22 = vpop.f32.mrf.mxu1 }
 0x216   :  { %v478_v23 = vadd.f32 %v474_v17, %v397_v19  ;;  %v1149_v17 = vld [vmem:[%s2035_s19] sm:$0xff] }
 0x218   :  { %v486_v24 = vadd.f32 %v1287_v21, %v478_v23 }
 0x21a   :  { %v1941_v25 = vmax.f32 %v486_v24, 0.0 }
 0x21c   :  { %1449 = vmatmul.mubr.msk.f32.vlgmr.msra.gmra.mxu1 %vm805_vm11, %v1941_v25  ;;  %1242 = vst.msk [vmem:[#allocation4] sm:$0x3] %vm1241_vm12, %v1941_v25 }
 0x21d   :  { %1452 = vmatpush3.msra.mxu1 %v797_v11  ;;  %1459 = vmatprep.mubr.msk.f32.mxu1 %vm1544_vm1, %v1543_v4 }
 0x21e   :  { %1453 = vmatprep.subr.mxu1 %v1543_v4 }
 0x21f   :  { %1454 = vmatpush3.msra.mxu1 %v796_v12 }
 0x220   :  { %1455 = vmatprep.subr.mxu1 %v1543_v4 }
 0x221   :  { %1456 = vmatpush3.msra.mxu1 %v795_v13 }
 0x222   :  { %1457 = vmatprep.subr.mxu1 %v1543_v4 }
 0x223   :  { %v672_v26 = vpop.f32.mrf.mxu0  ;;  %1458 = vmatpush3.msra.mxu1 %v794_v14 }
 0x224   :  { %1462 = vmatprep.subr.mxu1 %v1543_v4  ;;  %v673_v34 = vadd.f32 %v1290_v33, %v672_v26 }
 0x225   :  { %v1439_v27 = vpop.f32.mrf.mxu0 }
 0x226   :  { %v1966_v35 = vmax.f32 %v673_v34, 0.0 }
 0x232   :  { %v581_v29 = vpop.f32.mrf.mxu1 }
 0x233   :  { %v582_v30 = vadd.f32 %v1288_v28, %v581_v29 }
 0x234   :  { %v1420_v31 = vpop.f32.mrf.mxu1 }
 0x235   :  { %v1955_v32 = vmax.f32 %v582_v30, 0.0 }
 0x237   :  { %1460 = vmatmul.mubr.msk.f32.vlgmr.msra.gmra.mxu1 %vm805_vm11, %v1955_v32 }
 0x238   :  { %1463 = vmatpush3.msra.mxu1 %v797_v11  ;;  %1470 = vmatprep.mubr.msk.f32.mxu1 %vm1544_vm1, %v1543_v4 }
 0x239   :  { %1464 = vmatprep.subr.mxu1 %v1543_v4 }
 0x23a   :  { %1465 = vmatpush3.msra.mxu1 %v796_v12 }
 0x23b   :  { %1466 = vmatprep.subr.mxu1 %v1543_v4 }
 0x23c   :  { %1467 = vmatpush3.msra.mxu1 %v795_v13 }
 0x23d   :  { %1468 = vmatprep.subr.mxu1 %v1543_v4 }
 0x23e   :  { %1469 = vmatpush3.msra.mxu1 %v794_v14 }
 0x23f   :  { %1471 = vmatmul.mubr.msk.f32.vlgmr.msra.gmra.mxu1 %vm805_vm11, %v1966_v35  ;;  %1473 = vmatprep.subr.mxu1 %v1543_v4 }
 0x240   :  { %1474 = vmatpush3.msra.mxu1 %v797_v11  ;;  %1481 = vmatprep.mubr.msk.f32.mxu1 %vm1544_vm1, %v1543_v4 }
 0x241   :  { %1475 = vmatprep.subr.mxu1 %v1543_v4 }
 0x242   :  { %1476 = vmatpush3.msra.mxu1 %v796_v12 }
 0x243   :  { %1477 = vmatprep.subr.mxu1 %v1543_v4 }
 0x244   :  { %1478 = vmatpush3.msra.mxu1 %v795_v13  ;;  %v1152_v13 = vld [vmem:[%s2035_s19 + $0x18] sm:$0xff]  ;;  %s1549_s19 = smov [#allocation4]  }
 0x245   :  { %1479 = vmatprep.subr.mxu1 %v1543_v4  ;;  %s1264_s29 = sshll.u32 %s1549_s19, 4  ;;  %s1265_s29 = int_to_ptr.vmem [resolvable:$true] %s1264_s29 }
 0x246   :  { %1480 = vmatpush3.msra.mxu1 %v794_v14  ;;  %s1520_s30 = scalar_lea.vmem %s1265_s29, 32  ;;  %p1525_p1 = scmp.lt.s32.totalorder %s1265_s29, %s1265_s29 }
 0x247   :  { %1484 = vmatprep.subr.mxu1 %v1543_v4  ;;  %p1521_p0 = scmp.ne.s32.totalorder %s1265_s29, %s1520_s30  ;;  %p1526_p2 = scmp.lt.s32.totalorder %s1520_s30, %s1520_s30 }
 0x249   :  { %p1527_p3 = por %p1526_p2, %p1525_p1 }
 0x24b   :  { %p1528_p4 = pnand %p1527_p3, %p1521_p0 }
 0x256   :  { %v789_v37 = vpop.f32.mrf.mxu0 }
 0x257   :  { %v790_v38 = vadd.f32 %v1292_v36, %v789_v37 }
 0x258   :  { %v791_v39 = vpop.f32.mrf.mxu0 }
 0x259   :  { %v1981_v40 = vmax.f32 %v790_v38, 0.0 }
 0x25b   :  { %1482 = vmatmul.mubr.msk.f32.vlgmr.msra.gmra.mxu1 %vm805_vm11, %v1981_v40 }
 0x25c   :  { %1492 = vmatprep.mubr.msk.f32.mxu1 %vm1544_vm1, %v1543_v4  ;;  %1485 = vmatpush3.msra.mxu1 %v1152_v13 }
 0x25d   :  { %1486 = vmatprep.subr.mxu1 %v1543_v4 }
 0x25e   :  { %1487 = vmatpush3.msra.mxu1 %v1151_v15 }
 0x25f   :  { %1488 = vmatprep.subr.mxu1 %v1543_v4 }
 0x260   :  { %1489 = vmatpush3.msra.mxu1 %v1150_v16 }
 0x261   :  { %1490 = vmatprep.subr.mxu1 %v1543_v4 }
 0x262   :  { %1491 = vmatpush3.msra.mxu1 %v1149_v17 }
 0x2dc   :  { %v875_v41 = vpop.f32.mrf.mxu1 }
 0x2dd   :  { %v876_v49 = vadd.f32 %v1295_v47, %v875_v41 }
 0x2de   :  { %v1450_v42 = vpop.f32.mrf.mxu1 }
 0x2f7   :  { %v948_v43 = vpop.f32.mrf.mxu1 }
 0x2f8   :  { %v949_v48 = vadd.f32 %v1295_v47, %v948_v43 }
 0x2f9   :  { %v1461_v44 = vpop.f32.mrf.mxu1 }
 0x2fa   :  { %v1098_v51 = vmax.f32 %v876_v49, %v949_v48 }
 0x2ff   :  { %v1021_v45 = vpop.f32.mrf.mxu1 }
 0x300   :  { %v1022_v50 = vadd.f32 %v1295_v47, %v1021_v45 }
 0x301   :  { %v1472_v46 = vpop.f32.mrf.mxu1 }
 0x302   :  { %v1099_v53 = vmax.f32 %v1098_v51, %v1022_v50 }
 0x31b   :  { %v1094_v52 = vpop.f32.mrf.mxu1 }
 0x31c   :  { %v1095_v54 = vadd.f32 %v1295_v47, %v1094_v52 }
 0x31d   :  { %v1483_v55 = vpop.f32.mrf.mxu1 }
 0x31e   :  { %v1100_v56 = vmax.f32 %v1099_v53, %v1095_v54 }
 0x320   :  { %v1101_v57 = vsub.f32 %v876_v49, %v1100_v56  ;;  %v1104_v58 = vsub.f32 %v949_v48, %v1100_v56  ;;  %v1107_v59 = vsub.f32 %v1022_v50, %v1100_v56  ;;  %v1110_v60 = vsub.f32 %v1095_v54, %v1100_v56 }
 0x322   :  { %v1102_v61 = vmul.f32 1.442695, %v1101_v57  ;;  %v1105_v62 = vmul.f32 1.442695, %v1104_v58  ;;  %v1108_v63 = vmul.f32 1.442695, %v1107_v59 }
 0x323   :  { %v1111_v0 = vmul.f32 1.442695, %v1110_v60 }
 0x324   :  { %1506 = vpow2.f32 %v1102_v61 }
 0x325   :  { %1508 = vpow2.f32 %v1105_v62 }
 0x326   :  { %1510 = vpow2.f32 %v1108_v63 }
 0x327   :  { %1512 = vpow2.f32 %v1111_v0 }
 0x331   :  { %v1507_v1 = vpop.eup %1506 }
 0x332   :  { %v1509_v2 = vpop.eup %1508 }
 0x333   :  { %v1113_v3 = vadd.f32 %v1509_v2, %v1507_v1  ;;  %v1511_v5 = vpop.eup %1510 }
 0x334   :  { %v1513_v7 = vpop.eup %1512 }
 0x335   :  { %v1114_v6 = vadd.f32 %v1511_v5, %v1113_v3 }
 0x337   :  { %v1115_v8 = vadd.f32 %v1513_v7, %v1114_v6 }
 0x339   :  { %1514 = vrcp.f32 %v1115_v8 }
 0x346   :  { %v1515_v9 = vpop.eup %1514 }
 0x347   :  { %v1141_v10 = vmul.f32 %v1515_v9, %v1513_v7  ;;  %v1118_v11 = vmul.f32 %v1515_v9, %v1507_v1  ;;  %v1125_v12 = vmul.f32 %v1515_v9, %v1509_v2  ;;  %v1133_v14 = vmul.f32 %v1515_v9, %v1511_v5 }
 0x349   :  { %1144 = vperm.xlu0 %1504, %v1141_v10   ;;  %1121 = vperm.xlu1 %1505, %v1118_v11  }
 0x34d   :  { %1248 = vrot.lane.b32.xlu0 %v1966_v35, %s1546_s6  ;;  %1128 = vperm.xlu1 %1505, %v1125_v12  }
 0x351   :  { %1136 = vperm.xlu1 %1505, %v1133_v14  }
 0x355   :  { %1243 = vrot.lane.b32.xlu1 %v1955_v32, %s1547_s8 }
 0x359   :  { %1253 = vrot.lane.b32.xlu1 %v1981_v40, %s1548_s28 }
 0x3c4   :  { %v1122_v18 = vpop.permute.xlu1 %1121  ;;  %v1145_v21 = vpop.permute.xlu0 %1144 }
 0x3c5   :  { %v1124_v22 = vmul.f32 %v1122_v18, %v1941_v25  ;;  %v1147_v4 = vmul.f32 %v1145_v21, %v1981_v40 }
 0x3c8   :  { %v1129_v19 = vpop.permute.xlu1 %1128  ;;  %v1249_v29 = vpop.permute.xlu0 %1248 }
 0x3c9   :  { %v1131_v20 = vmul.f32 %v1129_v19, %v1955_v32 }
 0x3cb   :  { %v1132_v24 = vadd.f32 %v1131_v20, %v1124_v22 }
 0x3cc   :  { %v1137_v23 = vpop.permute.xlu1 %1136 }
 0x3cd   :  { %v1139_v26 = vmul.f32 %v1137_v23, %v1966_v35 }
 0x3cf   :  { %v1140_v27 = vadd.f32 %v1139_v26, %v1132_v24 }
 0x3d0   :  { %v1244_v28 = vpop.permute.xlu1 %1243 }
 0x3d1   :  { %v1148_v30 = vadd.f32 %v1147_v4, %v1140_v27  ;;  %1247 = vst.msk [vmem:[#allocation4] sm:$0x3] %vm1246_vm13, %v1244_v28 }
 0x3d2   :  { %1252 = vst.msk [vmem:[#allocation4] sm:$0x3] %vm1251_vm14, %v1249_v29 }
 0x3d3   :  { %1493 = vmatmul.mubr.msk.f32.vlgmr.msra.gmra.mxu1 %vm805_vm11, %v1148_v30 }
 0x3d4   :  { %v1254_v31 = vpop.permute.xlu1 %1253 }
 0x3d5   :  { %1257 = vst.msk [vmem:[#allocation4] sm:$0x3] %vm1256_vm15, %v1254_v31 }
 0x3d6   :  { %1531 = shalt.err (!%p1528_p4)
}
 0x3d7   :  { %1267 = dma.vmem_to_hbm [thread:$0]  %s1265_s29, 32, %s2036_s21, [#allocation5]   ;;  %v1300_v25 = vld [vmem:[#allocation3] ss:$0 sm:$0xff]  ;;  %vm1239_vm0 = vcmask 1024  }
 0x493   :  { %v1229_v32 = vpop.f32.mrf.mxu1 }
 0x494   :  { %v1230_v33 = vadd.f32 %v1300_v25, %v1229_v32 }
 0x495   :  { %v1494_v34 = vpop.f32.mrf.mxu1 }
 0x496   :  { %v1302_v35 = vmul.f32 -1.442695, %v1230_v33 }
 0x498   :  { %1516 = vpow2.f32 %v1302_v35 }
 0x4a5   :  { %v1517_v36 = vpop.eup %1516 }
 0x4a6   :  { %v1236_v37 = vadd.f32 1.0, %v1517_v36 }
 0x4a8   :  { %1518 = vrcp.f32 %v1236_v37 }
 0x4b5   :  { %v1519_v38 = vpop.eup %1518 }
 0x4b6   :  { %1240 = vst.msk [vmem:[%s2037_s22] sm:$0x3] %vm1239_vm0, %v1519_v38 }
 0x4b7   :  { %1540 = dma.done.wait [#allocation5], 32  }
 0x4b8   :  { %1541 = vsyncadd [#allocation5], 4294967264 }
 0x4b9   :  { %1275 = vsyncpa [#allocation5], 1 }

</bundles_post_ra>
